<compile_context>
chip_gen: v7x
topology: tpu7x:2x2x1
jax: 0.10.0
libtpu: 0.0.40
codegen_flags: <defaults>
</compile_context>

<pallas_src>
import jax
import jax.numpy as jnp
from jax import lax
from jax.experimental import pallas as pl
from jax.experimental.pallas import tpu as pltpu


# ---------------------------------------------------------------------------
# Kernels
# ---------------------------------------------------------------------------
def _gather_rows_kernel(labels_ref, table_ref, o_ref):
    """Per-row gather from the VMEM-resident table (small blocks, BB <= 8).

    labels_ref : SMEM (B_pad,) int32  -- scalar-prefetched labels (whole batch)
    table_ref  : VMEM (V, H_pad)      -- full embedding table, resident
    o_ref      : VMEM (BB, H_pad)     -- one sublane-aligned block of output rows
    """
    bb = o_ref.shape[0]
    base = pl.program_id(0) * bb
    # Static unroll: one dynamic-sublane load + one lane-dense row store per row.
    for i in range(bb):
        idx = labels_ref[base + i]
        o_ref[pl.ds(i, 1), :] = table_ref[pl.ds(idx, 1), :]


def _gather_onehot_kernel(labels_ref, table_ref, o_ref):
    """Vectorized gather: one-hot(labels) @ table on the MXU (BB > 8).

    labels_ref : VMEM (BB, 1) int32
    table_ref  : VMEM (V, H_pad)
    o_ref      : VMEM (BB, H_pad)
    """
    bb = o_ref.shape[0]
    v = table_ref.shape[0]
    labels = labels_ref[...]                                          # (BB, 1)
    onehot = labels == lax.broadcasted_iota(jnp.int32, (bb, v), 1)    # (BB, V)
    onehot = onehot.astype(table_ref.dtype)
    o_ref[...] = jnp.dot(
        onehot, table_ref[...], preferred_element_type=jnp.float32
    ).astype(o_ref.dtype)


# ---------------------------------------------------------------------------
# Wrapper
# ---------------------------------------------------------------------------
def _table_block_spec(shape, index_map, nbuf):
    """BlockSpec for the grid-invariant table; single-buffer it when requested."""
    if nbuf is None:
        return pl.BlockSpec(shape, index_map)
    return pl.BlockSpec(shape, index_map, pipeline_mode=pl.Buffered(nbuf))


def _vmem_limit(need_bytes, vmem_cap):
    # >= default scoped limit on all generations, + 1 MiB margin, <= physical.
    return int(min(max(need_bytes + (1 << 20), 32 * 1024 * 1024), vmem_cap))


def embedding_gather(labels, table, *, out_features=None, max_rows_per_block=512,
                     force_hbm_gather=False):
    """Pallas gather: out[i, :] = table[labels[i], :out_features]."""
    B = labels.shape[0]
    V, H = table.shape
    out_features = H if out_features is None else out_features
    itemsize = jnp.dtype(table.dtype).itemsize

    # Lane-dense H. No-op when the caller pre-pads at init (the fast path).
    H_pad = ((H + 127) // 128) * 128
    if H_pad != H:
        table = jnp.pad(table, ((0, 0), (0, H_pad - H)))

    # OOB safety: clamp labels into the valid table range (covers the CFG row).
    labels = jnp.clip(labels.astype(jnp.int32), 0, V - 1)

    # ---- path selection: VMEM-resident table vs. HBM row gather --------------
    table_bytes = V * H_pad * itemsize
    try:
        vmem_cap = int(pltpu.get_tpu_info().vmem_capacity_bytes)
    except Exception:  # conservative default (v7x physical VMEM per TC)
        vmem_cap = 64 * 1024 * 1024
    use_hbm = force_hbm_gather or (table_bytes > vmem_cap // 2)

    # ---- rows per grid step ---------------------------------------------------
    rows = ((B + 7) // 8) * 8                      # sublane-aligned row count
    if use_hbm:
        BB = min(rows, 64)                         # static per-row DMA unroll: keep modest
    else:
        BB = min(rows, max_rows_per_block)
        # Split into >= 2 output blocks when the batch is big enough so the
        # "parallel" grid axis actually shards across both TensorCores (v7x).
        if rows >= 32:
            BB = min(BB, ((rows // 2 + 7) // 8) * 8)
    B_pad = ((B + BB - 1) // BB) * BB
    if B_pad != B:
        labels = jnp.pad(labels, (0, B_pad - B))   # padded rows gather row 0, sliced off
    grid_b = B_pad // BB

    out_bytes = B_pad * H_pad * itemsize
    if use_hbm:
        cost = pl.CostEstimate(flops=0, transcendentals=0,
                               bytes_accessed=2 * out_bytes + B_pad * 4)
    else:
        cost = pl.CostEstimate(
            flops=(2 * B_pad * V * H_pad) if BB > 8 else 0,
            transcendentals=0,
            bytes_accessed=table_bytes + out_bytes + B_pad * 4)

    out_shape = jax.ShapeDtypeStruct((B_pad, H_pad), table.dtype)

    if not use_hbm:
        # -------------------- VMEM-resident table paths -----------------------
        def _need(nbuf_tbl):
            need = table_bytes * nbuf_tbl + 2 * BB * H_pad * itemsize
            if BB > 8:  # labels block (double-buffered) + one-hot intermediate
                need += 2 * BB * 4 + 2 * BB * V * itemsize
            return need

        if BB <= 8:
            def run(nbuf):
                return pl.pallas_call(
                    _gather_rows_kernel,
                    out_shape=out_shape,
                    grid_spec=pltpu.PrefetchScalarGridSpec(
                        num_scalar_prefetch=1,          # labels -> SMEM before the grid
                        grid=(grid_b,),
                        in_specs=[_table_block_spec((V, H_pad),
                                                    lambda b, lbl: (0, 0), nbuf)],
                        out_specs=pl.BlockSpec((BB, H_pad), lambda b, lbl: (b, 0)),
                    ),
                    compiler_params=pltpu.CompilerParams(
                        dimension_semantics=("parallel",),
                        vmem_limit_bytes=_vmem_limit(_need(nbuf or 2), vmem_cap)),
                    cost_estimate=cost,
                )(labels, table)
        else:
            labels2d = labels.reshape(B_pad, 1)

            def run(nbuf):
                return pl.pallas_call(
                    _gather_onehot_kernel,
                    out_shape=out_shape,
                    grid_spec=pltpu.PrefetchScalarGridSpec(
                        num_scalar_prefetch=0,
                        grid=(grid_b,),
                        in_specs=[
                            pl.BlockSpec((BB, 1), lambda b: (b, 0)),          # labels
                            _table_block_spec((V, H_pad), lambda b: (0, 0), nbuf),
                        ],
                        out_specs=pl.BlockSpec((BB, H_pad), lambda b: (b, 0)),
                    ),
                    compiler_params=pltpu.CompilerParams(
                        dimension_semantics=("parallel",),
                        vmem_limit_bytes=_vmem_limit(_need(nbuf or 2), vmem_cap)),
                    cost_estimate=cost,
                )(labels2d, table)

        try:
            out = run(1)        # single-buffer the grid-invariant table
        except Exception:       # pipeline_mode=Buffered(1) unsupported -> default (2 bufs)
            out = run(None)
    else:
        # -------------------- HBM row-gather fallback (big tables) ------------
        n_sem = min(8, BB)

        def _hbm_kernel(labels_ref, table_hbm, o_ref, buf, sem):
            bb = o_ref.shape[0]
            base = pl.program_id(0) * bb
            inflight = [None] * n_sem
            for i in range(bb):                     # batched row DMAs, n_sem in flight
                s = i % n_sem
                if inflight[s] is not None:
                    inflight[s].wait()
                idx = labels_ref[base + i]
                cp = pltpu.make_async_copy(table_hbm.at[pl.ds(idx, 1), :],
                                           buf.at[pl.ds(i, 1), :],
                                           sem.at[s])
                cp.start()
                inflight[s] = cp
            for cp in inflight:
                if cp is not None:
                    cp.wait()
            o_ref[...] = buf[...]

        out = pl.pallas_call(
            _hbm_kernel,
            out_shape=out_shape,
            grid_spec=pltpu.PrefetchScalarGridSpec(
                num_scalar_prefetch=1,
                grid=(grid_b,),
                in_specs=[pl.BlockSpec(memory_space=pl.ANY)],     # table stays in HBM
                out_specs=pl.BlockSpec((BB, H_pad), lambda b, lbl: (b, 0)),
                scratch_shapes=[pltpu.VMEM((BB, H_pad), table.dtype),
                                pltpu.SemaphoreType.DMA((n_sem,))],
            ),
            compiler_params=pltpu.CompilerParams(
                dimension_semantics=("parallel",),
                vmem_limit_bytes=_vmem_limit(3 * BB * H_pad * itemsize, vmem_cap)),
            cost_estimate=cost,
        )(labels, table)

    return out[:B, :out_features]


# ---------------------------------------------------------------------------
# Module
# ---------------------------------------------------------------------------
class LabelEmbedder:
    """JAX/Pallas port of the PyTorch LabelEmbedder (class labels -> embeddings,
    with label dropout for classifier-free guidance)."""

    def __init__(self, num_classes, hidden_size, dropout_prob, key,
                 param_dtype=jnp.float32):
        use_cfg_embedding = int(dropout_prob > 0)
        self.num_classes = num_classes
        self.hidden_size = hidden_size
        self.dropout_prob = dropout_prob
        vocab = num_classes + use_cfg_embedding
        # Deterministic synthetic init; shape matches nn.Embedding(num_classes+cfg, hidden).
        table = 0.02 * jax.random.normal(key, (vocab, hidden_size), dtype=jnp.float32)
        table = table.astype(param_dtype)
        # Lane-dense padding hoisted HERE (once), not per forward call.
        h_pad = ((hidden_size + 127) // 128) * 128
        if h_pad != hidden_size:
            table = jnp.pad(table, ((0, 0), (0, h_pad - hidden_size)))
        self.embedding_table = table            # (vocab, H_pad), lane-dense

    def token_drop(self, labels, rng=None, force_drop_ids=None):
        if force_drop_ids is None:
            if rng is None:
                raise ValueError("token_drop with random dropout requires an rng key")
            drop_ids = jax.random.uniform(rng, (labels.shape[0],)) < self.dropout_prob
        else:
            drop_ids = force_drop_ids == 1
        return jnp.where(drop_ids, self.num_classes, labels)

    def __call__(self, labels, train, rng=None, force_drop_ids=None):
        use_dropout = self.dropout_prob > 0
        if (train and use_dropout) or (force_drop_ids is not None):
            labels = self.token_drop(labels, rng, force_drop_ids)
        return embedding_gather(labels.astype(jnp.int32), self.embedding_table,
                                out_features=self.hidden_size)


# ---------------------------------------------------------------------------
# Demo / correctness checks
# ---------------------------------------------------------------------------
if __name__ == "__main__":
    key = jax.random.PRNGKey(0)
    k_table, k_labels, k_drop, k_table2 = jax.random.split(key, 4)

    num_classes, hidden_size, batch, dropout_prob = 10, 128, 8, 0.1
    embedder = LabelEmbedder(num_classes, hidden_size, dropout_prob, k_table)
    labels = jax.random.randint(k_labels, (batch,), 0, num_classes, dtype=jnp.int32)

    ref_table = embedder.embedding_table[:, :hidden_size]

    # 1) eval path (no dropout): small batch -> per-row resident gather (BB<=8).
    out_eval = jax.block_until_ready(embedder(labels, train=False))
    assert out_eval.shape == (batch, hidden_size)
    assert jnp.array_equal(out_eval, jnp.take(ref_table, labels, axis=0))

    # 2) forced-drop path (classifier-free guidance).
    force_drop_ids = jnp.array([1, 1, 1, 1, 0, 0, 0, 0], dtype=jnp.int32)
    out_drop = jax.block_until_ready(
        embedder(labels, train=True, force_drop_ids=force_drop_ids))
    eff_labels = jnp.where(force_drop_ids == 1, num_classes, labels)
    assert jnp.array_equal(out_drop, jnp.take(ref_table, eff_labels, axis=0))

    # 3) train-time random dropout (jax.random in place of torch.rand).
    out_train = jax.block_until_ready(embedder(labels, train=True, rng=k_drop))
    assert out_train.shape == (batch, hidden_size)

    # 4) larger batch -> one-hot MXU gather path, batch split into 2 grid blocks.
    big_labels = jax.random.randint(k_labels, (32,), 0, num_classes, dtype=jnp.int32)
    out_big = jax.block_until_ready(embedder(big_labels, train=False))
    assert jnp.array_equal(out_big, jnp.take(ref_table, big_labels, axis=0))

    # 5) HBM row-gather fallback (taken automatically when table > ~VMEM/2, e.g. v7x).
    out_hbm = jax.block_until_ready(
        embedding_gather(labels, embedder.embedding_table,
                         out_features=hidden_size, force_hbm_gather=True))
    assert jnp.array_equal(out_hbm, jnp.take(ref_table, labels, axis=0))

    # 6) bf16 table option + non-multiple-of-128 hidden (lane padding done at init).
    emb_bf16 = LabelEmbedder(num_classes, 96, dropout_prob, k_table2,
                             param_dtype=jnp.bfloat16)
    out_bf16 = jax.block_until_ready(emb_bf16(labels, train=False))
    assert out_bf16.shape == (batch, 96) and out_bf16.dtype == jnp.bfloat16
    assert jnp.array_equal(out_bf16,
                           jnp.take(emb_bf16.embedding_table[:, :96], labels, axis=0))

    print("KERNEL_OK")
</pallas_src>

<mosaic_0001>
module attributes {stable_mosaic.version = 11 : i64} {
  func.func @_gather_rows_kernel(%arg0: i32, %arg1: memref<8xi32, #tpu.memory_space<smem>>, %arg2: memref<11x128xf32, #tpu.memory_space<vmem>>, %arg3: memref<8x128xf32, #tpu.memory_space<vmem>>) attributes {dimension_semantics = [#tpu.dimension_semantics<parallel>], iteration_bounds = array<i64: 1>, scalar_prefetch = 1 : i64, scratch_operands = 0 : i64, tpu.core_type = #tpu.core_type<tc>, window_params = [{pipeline_mode = #tpu.pipeline_mode<synchronous>, transform_indices = @transform_0, window_bounds = array<i64: 11, 128>}, {transform_indices = @transform_1, window_bounds = array<i64: 8, 128>}]} {
    %c8_i32 = arith.constant 8 : i32
    %0 = arith.muli %arg0, %c8_i32 : i32
    %c0_i32 = arith.constant 0 : i32
    %1 = arith.addi %0, %c0_i32 : i32
    %2 = arith.index_cast %1 : i32 to index
    %3 = memref.load %arg1[%2] : memref<8xi32, #tpu.memory_space<smem>>
    %4 = arith.index_cast %3 : i32 to index
    %c0 = arith.constant 0 : index
    %5 = vector.load %arg2[%4, %c0] : memref<11x128xf32, #tpu.memory_space<vmem>>, vector<1x128xf32>
    %c0_0 = arith.constant 0 : index
    %c0_1 = arith.constant 0 : index
    %6 = vector.load %arg3[%c0_0, %c0_1] : memref<8x128xf32, #tpu.memory_space<vmem>>, vector<1x128xf32>
    tpu.vector_store %arg3[%c0_0, %c0_1], %5 {strides = array<i32>} : memref<8x128xf32, #tpu.memory_space<vmem>>, vector<1x128xf32>,
    %c1_i32 = arith.constant 1 : i32
    %7 = arith.addi %0, %c1_i32 : i32
    %8 = arith.index_cast %7 : i32 to index
    %9 = memref.load %arg1[%8] : memref<8xi32, #tpu.memory_space<smem>>
    %10 = arith.index_cast %9 : i32 to index
    %c0_2 = arith.constant 0 : index
    %11 = vector.load %arg2[%10, %c0_2] : memref<11x128xf32, #tpu.memory_space<vmem>>, vector<1x128xf32>
    %c1 = arith.constant 1 : index
    %c0_3 = arith.constant 0 : index
    %12 = vector.load %arg3[%c1, %c0_3] : memref<8x128xf32, #tpu.memory_space<vmem>>, vector<1x128xf32>
    tpu.vector_store %arg3[%c1, %c0_3], %11 {strides = array<i32>} : memref<8x128xf32, #tpu.memory_space<vmem>>, vector<1x128xf32>,
    %c2_i32 = arith.constant 2 : i32
    %13 = arith.addi %0, %c2_i32 : i32
    %14 = arith.index_cast %13 : i32 to index
    %15 = memref.load %arg1[%14] : memref<8xi32, #tpu.memory_space<smem>>
    %16 = arith.index_cast %15 : i32 to index
    %c0_4 = arith.constant 0 : index
    %17 = vector.load %arg2[%16, %c0_4] : memref<11x128xf32, #tpu.memory_space<vmem>>, vector<1x128xf32>
    %c2 = arith.constant 2 : index
    %c0_5 = arith.constant 0 : index
    %18 = vector.load %arg3[%c2, %c0_5] : memref<8x128xf32, #tpu.memory_space<vmem>>, vector<1x128xf32>
    tpu.vector_store %arg3[%c2, %c0_5], %17 {strides = array<i32>} : memref<8x128xf32, #tpu.memory_space<vmem>>, vector<1x128xf32>,
    %c3_i32 = arith.constant 3 : i32
    %19 = arith.addi %0, %c3_i32 : i32
    %20 = arith.index_cast %19 : i32 to index
    %21 = memref.load %arg1[%20] : memref<8xi32, #tpu.memory_space<smem>>
    %22 = arith.index_cast %21 : i32 to index
    %c0_6 = arith.constant 0 : index
    %23 = vector.load %arg2[%22, %c0_6] : memref<11x128xf32, #tpu.memory_space<vmem>>, vector<1x128xf32>
    %c3 = arith.constant 3 : index
    %c0_7 = arith.constant 0 : index
    %24 = vector.load %arg3[%c3, %c0_7] : memref<8x128xf32, #tpu.memory_space<vmem>>, vector<1x128xf32>
    tpu.vector_store %arg3[%c3, %c0_7], %23 {strides = array<i32>} : memref<8x128xf32, #tpu.memory_space<vmem>>, vector<1x128xf32>,
    %c4_i32 = arith.constant 4 : i32
    %25 = arith.addi %0, %c4_i32 : i32
    %26 = arith.index_cast %25 : i32 to index
    %27 = memref.load %arg1[%26] : memref<8xi32, #tpu.memory_space<smem>>
    %28 = arith.index_cast %27 : i32 to index
    %c0_8 = arith.constant 0 : index
    %29 = vector.load %arg2[%28, %c0_8] : memref<11x128xf32, #tpu.memory_space<vmem>>, vector<1x128xf32>
    %c4 = arith.constant 4 : index
    %c0_9 = arith.constant 0 : index
    %30 = vector.load %arg3[%c4, %c0_9] : memref<8x128xf32, #tpu.memory_space<vmem>>, vector<1x128xf32>
    tpu.vector_store %arg3[%c4, %c0_9], %29 {strides = array<i32>} : memref<8x128xf32, #tpu.memory_space<vmem>>, vector<1x128xf32>,
    %c5_i32 = arith.constant 5 : i32
    %31 = arith.addi %0, %c5_i32 : i32
    %32 = arith.index_cast %31 : i32 to index
    %33 = memref.load %arg1[%32] : memref<8xi32, #tpu.memory_space<smem>>
    %34 = arith.index_cast %33 : i32 to index
    %c0_10 = arith.constant 0 : index
    %35 = vector.load %arg2[%34, %c0_10] : memref<11x128xf32, #tpu.memory_space<vmem>>, vector<1x128xf32>
    %c5 = arith.constant 5 : index
    %c0_11 = arith.constant 0 : index
    %36 = vector.load %arg3[%c5, %c0_11] : memref<8x128xf32, #tpu.memory_space<vmem>>, vector<1x128xf32>
    tpu.vector_store %arg3[%c5, %c0_11], %35 {strides = array<i32>} : memref<8x128xf32, #tpu.memory_space<vmem>>, vector<1x128xf32>,
    %c6_i32 = arith.constant 6 : i32
    %37 = arith.addi %0, %c6_i32 : i32
    %38 = arith.index_cast %37 : i32 to index
    %39 = memref.load %arg1[%38] : memref<8xi32, #tpu.memory_space<smem>>
    %40 = arith.index_cast %39 : i32 to index
    %c0_12 = arith.constant 0 : index
    %41 = vector.load %arg2[%40, %c0_12] : memref<11x128xf32, #tpu.memory_space<vmem>>, vector<1x128xf32>
    %c6 = arith.constant 6 : index
    %c0_13 = arith.constant 0 : index
    %42 = vector.load %arg3[%c6, %c0_13] : memref<8x128xf32, #tpu.memory_space<vmem>>, vector<1x128xf32>
    tpu.vector_store %arg3[%c6, %c0_13], %41 {strides = array<i32>} : memref<8x128xf32, #tpu.memory_space<vmem>>, vector<1x128xf32>,
    %c7_i32 = arith.constant 7 : i32
    %43 = arith.addi %0, %c7_i32 : i32
    %44 = arith.index_cast %43 : i32 to index
    %45 = memref.load %arg1[%44] : memref<8xi32, #tpu.memory_space<smem>>
    %46 = arith.index_cast %45 : i32 to index
    %c0_14 = arith.constant 0 : index
    %47 = vector.load %arg2[%46, %c0_14] : memref<11x128xf32, #tpu.memory_space<vmem>>, vector<1x128xf32>
    %c7 = arith.constant 7 : index
    %c0_15 = arith.constant 0 : index
    %48 = vector.load %arg3[%c7, %c0_15] : memref<8x128xf32, #tpu.memory_space<vmem>>, vector<1x128xf32>
    tpu.vector_store %arg3[%c7, %c0_15], %47 {strides = array<i32>} : memref<8x128xf32, #tpu.memory_space<vmem>>, vector<1x128xf32>,
    return
  }
  func.func @transform_0(%arg0: i32, %arg1: memref<8xi32, #tpu.memory_space<smem>>) -> (i32, i32) {
    %c0_i32 = arith.constant 0 : i32
    %c0_i32_0 = arith.constant 0 : i32
    %c0_i32_1 = arith.constant 0 : i32
    return %c0_i32, %c0_i32_0 : i32, i32
  }
  func.func @transform_1(%arg0: i32, %arg1: memref<8xi32, #tpu.memory_space<smem>>) -> (i32, i32) {
    %c0_i32 = arith.constant 0 : i32
    %c0_i32_0 = arith.constant 0 : i32
    return %arg0, %c0_i32 : i32, i32
  }
}

module attributes {stable_mosaic.version = 11 : i64} {
  func.func @_gather_rows_kernel(%arg0: i32, %arg1: memref<8xi32, #tpu.memory_space<smem>>, %arg2: memref<11x128xf32, #tpu.memory_space<vmem>>, %arg3: memref<8x128xf32, #tpu.memory_space<vmem>>) attributes {dimension_semantics = [#tpu.dimension_semantics<parallel>], iteration_bounds = array<i64: 1>, scalar_prefetch = 1 : i64, scratch_operands = 0 : i64, tpu.core_type = #tpu.core_type<tc>, window_params = [{pipeline_mode = #tpu.pipeline_mode<synchronous>, transform_indices = @transform_0, window_bounds = array<i64: 11, 128>}, {transform_indices = @transform_1, window_bounds = array<i64: 8, 128>}]} {
    %c8_i32 = arith.constant 8 : i32
    %0 = arith.muli %arg0, %c8_i32 : i32
    %c0_i32 = arith.constant 0 : i32
    %1 = arith.addi %0, %c0_i32 : i32
    %2 = arith.index_cast %1 : i32 to index
    %3 = memref.load %arg1[%2] : memref<8xi32, #tpu.memory_space<smem>>
    %4 = arith.index_cast %3 : i32 to index
    %c0 = arith.constant 0 : index
    %5 = vector.load %arg2[%4, %c0] : memref<11x128xf32, #tpu.memory_space<vmem>>, vector<1x128xf32>
    %c0_0 = arith.constant 0 : index
    %c0_1 = arith.constant 0 : index
    %6 = vector.load %arg3[%c0_0, %c0_1] : memref<8x128xf32, #tpu.memory_space<vmem>>, vector<1x128xf32>
    tpu.vector_store %arg3[%c0_0, %c0_1], %5 {strides = array<i32>} : memref<8x128xf32, #tpu.memory_space<vmem>>, vector<1x128xf32>,
    %c1_i32 = arith.constant 1 : i32
    %7 = arith.addi %0, %c1_i32 : i32
    %8 = arith.index_cast %7 : i32 to index
    %9 = memref.load %arg1[%8] : memref<8xi32, #tpu.memory_space<smem>>
    %10 = arith.index_cast %9 : i32 to index
    %c0_2 = arith.constant 0 : index
    %11 = vector.load %arg2[%10, %c0_2] : memref<11x128xf32, #tpu.memory_space<vmem>>, vector<1x128xf32>
    %c1 = arith.constant 1 : index
    %c0_3 = arith.constant 0 : index
    %12 = vector.load %arg3[%c1, %c0_3] : memref<8x128xf32, #tpu.memory_space<vmem>>, vector<1x128xf32>
    tpu.vector_store %arg3[%c1, %c0_3], %11 {strides = array<i32>} : memref<8x128xf32, #tpu.memory_space<vmem>>, vector<1x128xf32>,
    %c2_i32 = arith.constant 2 : i32
    %13 = arith.addi %0, %c2_i32 : i32
    %14 = arith.index_cast %13 : i32 to index
    %15 = memref.load %arg1[%14] : memref<8xi32, #tpu.memory_space<smem>>
    %16 = arith.index_cast %15 : i32 to index
    %c0_4 = arith.constant 0 : index
    %17 = vector.load %arg2[%16, %c0_4] : memref<11x128xf32, #tpu.memory_space<vmem>>, vector<1x128xf32>
    %c2 = arith.constant 2 : index
    %c0_5 = arith.constant 0 : index
    %18 = vector.load %arg3[%c2, %c0_5] : memref<8x128xf32, #tpu.memory_space<vmem>>, vector<1x128xf32>
    tpu.vector_store %arg3[%c2, %c0_5], %17 {strides = array<i32>} : memref<8x128xf32, #tpu.memory_space<vmem>>, vector<1x128xf32>,
    %c3_i32 = arith.constant 3 : i32
    %19 = arith.addi %0, %c3_i32 : i32
    %20 = arith.index_cast %19 : i32 to index
    %21 = memref.load %arg1[%20] : memref<8xi32, #tpu.memory_space<smem>>
    %22 = arith.index_cast %21 : i32 to index
    %c0_6 = arith.constant 0 : index
    %23 = vector.load %arg2[%22, %c0_6] : memref<11x128xf32, #tpu.memory_space<vmem>>, vector<1x128xf32>
    %c3 = arith.constant 3 : index
    %c0_7 = arith.constant 0 : index
    %24 = vector.load %arg3[%c3, %c0_7] : memref<8x128xf32, #tpu.memory_space<vmem>>, vector<1x128xf32>
    tpu.vector_store %arg3[%c3, %c0_7], %23 {strides = array<i32>} : memref<8x128xf32, #tpu.memory_space<vmem>>, vector<1x128xf32>,
    %c4_i32 = arith.constant 4 : i32
    %25 = arith.addi %0, %c4_i32 : i32
    %26 = arith.index_cast %25 : i32 to index
    %27 = memref.load %arg1[%26] : memref<8xi32, #tpu.memory_space<smem>>
    %28 = arith.index_cast %27 : i32 to index
    %c0_8 = arith.constant 0 : index
    %29 = vector.load %arg2[%28, %c0_8] : memref<11x128xf32, #tpu.memory_space<vmem>>, vector<1x128xf32>
    %c4 = arith.constant 4 : index
    %c0_9 = arith.constant 0 : index
    %30 = vector.load %arg3[%c4, %c0_9] : memref<8x128xf32, #tpu.memory_space<vmem>>, vector<1x128xf32>
    tpu.vector_store %arg3[%c4, %c0_9], %29 {strides = array<i32>} : memref<8x128xf32, #tpu.memory_space<vmem>>, vector<1x128xf32>,
    %c5_i32 = arith.constant 5 : i32
    %31 = arith.addi %0, %c5_i32 : i32
    %32 = arith.index_cast %31 : i32 to index
    %33 = memref.load %arg1[%32] : memref<8xi32, #tpu.memory_space<smem>>
    %34 = arith.index_cast %33 : i32 to index
    %c0_10 = arith.constant 0 : index
    %35 = vector.load %arg2[%34, %c0_10] : memref<11x128xf32, #tpu.memory_space<vmem>>, vector<1x128xf32>
    %c5 = arith.constant 5 : index
    %c0_11 = arith.constant 0 : index
    %36 = vector.load %arg3[%c5, %c0_11] : memref<8x128xf32, #tpu.memory_space<vmem>>, vector<1x128xf32>
    tpu.vector_store %arg3[%c5, %c0_11], %35 {strides = array<i32>} : memref<8x128xf32, #tpu.memory_space<vmem>>, vector<1x128xf32>,
    %c6_i32 = arith.constant 6 : i32
    %37 = arith.addi %0, %c6_i32 : i32
    %38 = arith.index_cast %37 : i32 to index
    %39 = memref.load %arg1[%38] : memref<8xi32, #tpu.memory_space<smem>>
    %40 = arith.index_cast %39 : i32 to index
    %c0_12 = arith.constant 0 : index
    %41 = vector.load %arg2[%40, %c0_12] : memref<11x128xf32, #tpu.memory_space<vmem>>, vector<1x128xf32>
    %c6 = arith.constant 6 : index
    %c0_13 = arith.constant 0 : index
    %42 = vector.load %arg3[%c6, %c0_13] : memref<8x128xf32, #tpu.memory_space<vmem>>, vector<1x128xf32>
    tpu.vector_store %arg3[%c6, %c0_13], %41 {strides = array<i32>} : memref<8x128xf32, #tpu.memory_space<vmem>>, vector<1x128xf32>,
    %c7_i32 = arith.constant 7 : i32
    %43 = arith.addi %0, %c7_i32 : i32
    %44 = arith.index_cast %43 : i32 to index
    %45 = memref.load %arg1[%44] : memref<8xi32, #tpu.memory_space<smem>>
    %46 = arith.index_cast %45 : i32 to index
    %c0_14 = arith.constant 0 : index
    %47 = vector.load %arg2[%46, %c0_14] : memref<11x128xf32, #tpu.memory_space<vmem>>, vector<1x128xf32>
    %c7 = arith.constant 7 : index
    %c0_15 = arith.constant 0 : index
    %48 = vector.load %arg3[%c7, %c0_15] : memref<8x128xf32, #tpu.memory_space<vmem>>, vector<1x128xf32>
    tpu.vector_store %arg3[%c7, %c0_15], %47 {strides = array<i32>} : memref<8x128xf32, #tpu.memory_space<vmem>>, vector<1x128xf32>,
    return
  }
  func.func @transform_0(%arg0: i32, %arg1: memref<8xi32, #tpu.memory_space<smem>>) -> (i32, i32) {
    %c0_i32 = arith.constant 0 : i32
    %c0_i32_0 = arith.constant 0 : i32
    %c0_i32_1 = arith.constant 0 : i32
    return %c0_i32, %c0_i32_0 : i32, i32
  }
  func.func @transform_1(%arg0: i32, %arg1: memref<8xi32, #tpu.memory_space<smem>>) -> (i32, i32) {
    %c0_i32 = arith.constant 0 : i32
    %c0_i32_0 = arith.constant 0 : i32
    return %arg0, %c0_i32 : i32, i32
  }
}

</mosaic_0001>

<bundles_post_ra>
// kernel: tpu_custom_call.1
= control target key start
LH: loop header
LB: loop body
LE: loop exit
PB: predicated region body
PF: predicated region fallthrough
CT: control target
= control target key end

     0   :  { %s226_s0 = inlined_call_operand.hbm [shape: s32[8], index: 0, kind: input, shape index: {}]   ;;  %s227_s1 = inlined_call_operand.hbm [shape: f32[11,128], index: 1, kind: input, shape index: {}]   ;;  %s228_s2 = inlined_call_operand.hbm [shape: f32[8,128], index: 2, kind: output, shape index: {}]  }
   0x1   :  { %s103_s11 = scalar_lea.hbm %s226_s0, 16 }
   0x2   :  { %p104_p0 = scmp.ne.s32.totalorder %s226_s0, %s103_s11  ;;  %p107_p1 = scmp.lt.u32.totalorder %s103_s11, %s226_s0 }
   0x4   :  { %p109_p2 = pnand %p107_p1, %p104_p0 }
   0x6   :  { %112 = shalt.err (!%p109_p2)  }
   0x7   :  { %s163_s16 = smov [#allocation3]  }
   0x8   :  { %8 = dma.hbm_to_smem %s226_s0, 16, %s163_s16, [#allocation2] }
   0x9   :  { %157 = dma.done.wait [#allocation2], 16 }
   0xa   :  { %158 = vsyncadd [#allocation2], 4294967280 }
   0xb   :  { %10 = sfence }
   0xc   :  { %11 = vsyncpa [#allocation5], 0 }
   0xd   :  { %12 = vsyncpa [#allocation6], 0  ;;  %s164_s19 = smov [#allocation4]   ;;  %s113_s23 = scalar_lea.hbm %s227_s1, 256 }
   0xe   :  { %s18_s20 = sshll.u32 %s164_s19, 4  ;;  %p114_p3 = scmp.ne.s32.totalorder %s227_s1, %s113_s23  ;;  %s19_s20 = int_to_ptr.vmem [resolvable:$true] %s18_s20 }
   0xf   :  { %p117_p4 = scmp.lt.u32.totalorder %s113_s23, %s227_s1 }
  0x11   :  { %p119_p5 = pnand %p117_p4, %p114_p3 }
  0x13   :  { %122 = shalt.err (!%p119_p5)
}
  0x14   :  { %s123_s0 = scalar_lea.vmem %s19_s20, 256  ;;  %p128_p7 = scmp.lt.s32.totalorder %s19_s20, %s19_s20 }
  0x15   :  { %p124_p6 = scmp.ne.s32.totalorder %s19_s20, %s123_s0  ;;  %p129_p8 = scmp.lt.s32.totalorder %s123_s0, %s123_s0 }
  0x17   :  { %p130_p9 = por %p129_p8, %p128_p7 }
  0x19   :  { %p131_p10 = pnand %p130_p9, %p124_p6 }
  0x1b   :  { %134 = shalt.err (!%p131_p10)
}
  0x1c   :  { %s165_s28 = smov 128   ;;  %s166_s29 = smov 8  }
  0x1d   :  { %24 = dma.hbm_to_vmem [thread:$0]  %s227_s1, 256, %s19_s20, [#allocation5], %s165_s28, %s165_s28, %s166_s29  }
  0x1e   :  { %159 = dma.done.wait [#allocation5], 256  }
  0x1f   :  { %160 = vsyncadd [#allocation5], 4294967040  ;;  %s29_s4 = sld [smem:[#allocation3]]  ;;  %s91_s5 = sld [smem:[#allocation3 + $0x1]] }
  0x20   :  { %s92_s6 = sld [smem:[#allocation3 + $0x2]]  ;;  %s93_s7 = sld [smem:[#allocation3 + $0x3]] }
  0x21   :  { %s94_s8 = sld [smem:[#allocation3 + $0x4]]  ;;  %s95_s9 = sld [smem:[#allocation3 + $0x5]] }
  0x22   :  { %s96_s10 = sld [smem:[#allocation3 + $0x6]]  ;;  %s97_s11 = sld [smem:[#allocation3 + $0x7]] }
  0x23   :  { %s167_s12 = smov [#allocation7]  }
  0x24   :  { %s74_s13 = sshll.u32 %s167_s12, 4  ;;  %s207_s13 = int_to_ptr.vmem [resolvable:$true] %s74_s13 }
  0x25   :  { %s30_s14 = scalar_lea.vmem [#allocation4], %s29_s4  ;;  %s35_s15 = scalar_lea.vmem [#allocation4], %s91_s5 }
  0x26   :  { %v31_v0 = vld [vmem:[%s30_s14] sm:$0x1]  ;;  %s40_s1 = scalar_lea.vmem [#allocation4], %s92_s6  ;;  %s45_s16 = scalar_lea.vmem [#allocation4], %s93_s7 }
  0x27   :  { %v36_v1 = vld [vmem:[%s35_s15] sm:$0x1]  ;;  %32 = vst [vmem:[#allocation7] sm:$0x1] %v31_v0  ;;  %s50_s17 = scalar_lea.vmem [#allocation4], %s94_s8  ;;  %s55_s18 = scalar_lea.vmem [#allocation4], %s95_s9 }
  0x28   :  { %37 = vst [vmem:[#allocation7 + $0x1] sm:$0x1] %v36_v1  ;;  %v41_v2 = vld [vmem:[%s40_s1] sm:$0x1]  ;;  %s60_s19 = scalar_lea.vmem [#allocation4], %s96_s10  ;;  %s65_s20 = scalar_lea.vmem [#allocation4], %s97_s11 }
  0x29   :  { %v46_v3 = vld [vmem:[%s45_s16] sm:$0x1]  ;;  %42 = vst [vmem:[#allocation7 + $0x2] sm:$0x1] %v41_v2  ;;  %s135_s21 = scalar_lea.vmem %s207_s13, 128  ;;  %p140_p12 = scmp.lt.s32.totalorder %s207_s13, %s207_s13 }
  0x2a   :  { %47 = vst [vmem:[#allocation7 + $0x3] sm:$0x1] %v46_v3  ;;  %v51_v4 = vld [vmem:[%s50_s17] sm:$0x1]  ;;  %p136_p11 = scmp.ne.s32.totalorder %s207_s13, %s135_s21  ;;  %p141_p13 = scmp.lt.s32.totalorder %s135_s21, %s135_s21 }
  0x2b   :  { %v56_v5 = vld [vmem:[%s55_s18] sm:$0x1]  ;;  %52 = vst [vmem:[#allocation7 + $0x4] sm:$0x1] %v51_v4 }
  0x2c   :  { %57 = vst [vmem:[#allocation7 + $0x5] sm:$0x1] %v56_v5  ;;  %v61_v6 = vld [vmem:[%s60_s19] sm:$0x1]  ;;  %p142_p0 = por %p141_p13, %p140_p12 }
  0x2d   :  { %v66_v7 = vld [vmem:[%s65_s20] sm:$0x1]  ;;  %62 = vst [vmem:[#allocation7 + $0x6] sm:$0x1] %v61_v6 }
  0x2e   :  { %67 = vst [vmem:[#allocation7 + $0x7] sm:$0x1] %v66_v7  ;;  %p143_p1 = pnand %p142_p0, %p136_p11 }
  0x30   :  { %146 = shalt.err (!%p143_p1)
}
  0x31   :  { %s147_s24 = scalar_lea.hbm %s228_s2, 128 }
  0x32   :  { %p148_p2 = scmp.ne.s32.totalorder %s228_s2, %s147_s24  ;;  %p151_p3 = scmp.lt.u32.totalorder %s147_s24, %s228_s2 }
  0x34   :  { %p153_p4 = pnand %p151_p3, %p148_p2 }
  0x36   :  { %156 = shalt.err (!%p153_p4)
}
  0x37   :  { %77 = dma.vmem_to_hbm [thread:$0]  %s207_s13, 128, %s228_s2, [#allocation6]  }
  0x38   :  { %161 = dma.done.wait [#allocation6], 128  }
  0x39   :  { %162 = vsyncadd [#allocation6], 4294967168 }
  0x3a   :  { %81 = vsyncpa [#allocation5], 1 }
  0x3b   :  { %82 = vsyncpa [#allocation6], 1 }

// kernel: tpu_custom_call.1
= control target key start
LH: loop header
LB: loop body
LE: loop exit
PB: predicated region body
PF: predicated region fallthrough
CT: control target
= control target key end

     0   :  { %s226_s0 = inlined_call_operand.hbm [shape: s32[8], index: 0, kind: input, shape index: {}]   ;;  %s227_s1 = inlined_call_operand.hbm [shape: f32[11,128], index: 1, kind: input, shape index: {}]   ;;  %s228_s2 = inlined_call_operand.hbm [shape: f32[8,128], index: 2, kind: output, shape index: {}]  }
   0x1   :  { %s103_s11 = scalar_lea.hbm %s226_s0, 16 }
   0x2   :  { %p104_p0 = scmp.ne.s32.totalorder %s226_s0, %s103_s11  ;;  %p107_p1 = scmp.lt.u32.totalorder %s103_s11, %s226_s0 }
   0x4   :  { %p109_p2 = pnand %p107_p1, %p104_p0 }
   0x6   :  { %112 = shalt.err (!%p109_p2)  }
   0x7   :  { %s163_s16 = smov [#allocation3]  }
   0x8   :  { %8 = dma.hbm_to_smem %s226_s0, 16, %s163_s16, [#allocation2] }
   0x9   :  { %157 = dma.done.wait [#allocation2], 16 }
   0xa   :  { %158 = vsyncadd [#allocation2], 4294967280 }
   0xb   :  { %10 = sfence }
   0xc   :  { %11 = vsyncpa [#allocation5], 0 }
   0xd   :  { %12 = vsyncpa [#allocation6], 0  ;;  %s164_s19 = smov [#allocation4]   ;;  %s113_s23 = scalar_lea.hbm %s227_s1, 256 }
   0xe   :  { %s18_s20 = sshll.u32 %s164_s19, 4  ;;  %p114_p3 = scmp.ne.s32.totalorder %s227_s1, %s113_s23  ;;  %s19_s20 = int_to_ptr.vmem [resolvable:$true] %s18_s20 }
   0xf   :  { %p117_p4 = scmp.lt.u32.totalorder %s113_s23, %s227_s1 }
  0x11   :  { %p119_p5 = pnand %p117_p4, %p114_p3 }
  0x13   :  { %122 = shalt.err (!%p119_p5)
}
  0x14   :  { %s123_s0 = scalar_lea.vmem %s19_s20, 256  ;;  %p128_p7 = scmp.lt.s32.totalorder %s19_s20, %s19_s20 }
  0x15   :  { %p124_p6 = scmp.ne.s32.totalorder %s19_s20, %s123_s0  ;;  %p129_p8 = scmp.lt.s32.totalorder %s123_s0, %s123_s0 }
  0x17   :  { %p130_p9 = por %p129_p8, %p128_p7 }
  0x19   :  { %p131_p10 = pnand %p130_p9, %p124_p6 }
  0x1b   :  { %134 = shalt.err (!%p131_p10)
}
  0x1c   :  { %s165_s28 = smov 128   ;;  %s166_s29 = smov 8  }
  0x1d   :  { %24 = dma.hbm_to_vmem [thread:$0]  %s227_s1, 256, %s19_s20, [#allocation5], %s165_s28, %s165_s28, %s166_s29  }
  0x1e   :  { %159 = dma.done.wait [#allocation5], 256  }
  0x1f   :  { %160 = vsyncadd [#allocation5], 4294967040  ;;  %s29_s4 = sld [smem:[#allocation3]]  ;;  %s91_s5 = sld [smem:[#allocation3 + $0x1]] }
  0x20   :  { %s92_s6 = sld [smem:[#allocation3 + $0x2]]  ;;  %s93_s7 = sld [smem:[#allocation3 + $0x3]] }
  0x21   :  { %s94_s8 = sld [smem:[#allocation3 + $0x4]]  ;;  %s95_s9 = sld [smem:[#allocation3 + $0x5]] }
  0x22   :  { %s96_s10 = sld [smem:[#allocation3 + $0x6]]  ;;  %s97_s11 = sld [smem:[#allocation3 + $0x7]] }
  0x23   :  { %s167_s12 = smov [#allocation7]  }
  0x24   :  { %s74_s13 = sshll.u32 %s167_s12, 4  ;;  %s207_s13 = int_to_ptr.vmem [resolvable:$true] %s74_s13 }
  0x25   :  { %s30_s14 = scalar_lea.vmem [#allocation4], %s29_s4  ;;  %s35_s15 = scalar_lea.vmem [#allocation4], %s91_s5 }
  0x26   :  { %v31_v0 = vld [vmem:[%s30_s14] sm:$0x1]  ;;  %s40_s1 = scalar_lea.vmem [#allocation4], %s92_s6  ;;  %s45_s16 = scalar_lea.vmem [#allocation4], %s93_s7 }
  0x27   :  { %v36_v1 = vld [vmem:[%s35_s15] sm:$0x1]  ;;  %32 = vst [vmem:[#allocation7] sm:$0x1] %v31_v0  ;;  %s50_s17 = scalar_lea.vmem [#allocation4], %s94_s8  ;;  %s55_s18 = scalar_lea.vmem [#allocation4], %s95_s9 }
  0x28   :  { %37 = vst [vmem:[#allocation7 + $0x1] sm:$0x1] %v36_v1  ;;  %v41_v2 = vld [vmem:[%s40_s1] sm:$0x1]  ;;  %s60_s19 = scalar_lea.vmem [#allocation4], %s96_s10  ;;  %s65_s20 = scalar_lea.vmem [#allocation4], %s97_s11 }
  0x29   :  { %v46_v3 = vld [vmem:[%s45_s16] sm:$0x1]  ;;  %42 = vst [vmem:[#allocation7 + $0x2] sm:$0x1] %v41_v2  ;;  %s135_s21 = scalar_lea.vmem %s207_s13, 128  ;;  %p140_p12 = scmp.lt.s32.totalorder %s207_s13, %s207_s13 }
  0x2a   :  { %47 = vst [vmem:[#allocation7 + $0x3] sm:$0x1] %v46_v3  ;;  %v51_v4 = vld [vmem:[%s50_s17] sm:$0x1]  ;;  %p136_p11 = scmp.ne.s32.totalorder %s207_s13, %s135_s21  ;;  %p141_p13 = scmp.lt.s32.totalorder %s135_s21, %s135_s21 }
  0x2b   :  { %v56_v5 = vld [vmem:[%s55_s18] sm:$0x1]  ;;  %52 = vst [vmem:[#allocation7 + $0x4] sm:$0x1] %v51_v4 }
  0x2c   :  { %57 = vst [vmem:[#allocation7 + $0x5] sm:$0x1] %v56_v5  ;;  %v61_v6 = vld [vmem:[%s60_s19] sm:$0x1]  ;;  %p142_p0 = por %p141_p13, %p140_p12 }
  0x2d   :  { %v66_v7 = vld [vmem:[%s65_s20] sm:$0x1]  ;;  %62 = vst [vmem:[#allocation7 + $0x6] sm:$0x1] %v61_v6 }
  0x2e   :  { %67 = vst [vmem:[#allocation7 + $0x7] sm:$0x1] %v66_v7  ;;  %p143_p1 = pnand %p142_p0, %p136_p11 }
  0x30   :  { %146 = shalt.err (!%p143_p1)
}
  0x31   :  { %s147_s24 = scalar_lea.hbm %s228_s2, 128 }
  0x32   :  { %p148_p2 = scmp.ne.s32.totalorder %s228_s2, %s147_s24  ;;  %p151_p3 = scmp.lt.u32.totalorder %s147_s24, %s228_s2 }
  0x34   :  { %p153_p4 = pnand %p151_p3, %p148_p2 }
  0x36   :  { %156 = shalt.err (!%p153_p4)
}
  0x37   :  { %77 = dma.vmem_to_hbm [thread:$0]  %s207_s13, 128, %s228_s2, [#allocation6]  }
  0x38   :  { %161 = dma.done.wait [#allocation6], 128  }
  0x39   :  { %162 = vsyncadd [#allocation6], 4294967168 }
  0x3a   :  { %81 = vsyncpa [#allocation5], 1 }
  0x3b   :  { %82 = vsyncpa [#allocation6], 1 }

</bundles_post_ra>
